<compile_context>
chip_gen: v7x
topology: tpu7x:2x2x1
jax: 0.10.0
libtpu: 0.0.40
codegen_flags: <defaults>
</compile_context>

<pallas_src>
import functools

import jax
import jax.numpy as jnp
from jax.experimental import pallas as pl
from jax.experimental.pallas import tpu as pltpu

IN_FEATURES = 30


def _round_up(n, m):
    return ((n + m - 1) // m) * m


def _affine_kernel(x_ref, w_ref, b_ref, o_ref):
    # x_ref: (TILE_B, 30) VMEM      w_ref: (1, 30) VMEM (grid-resident)
    # b_ref: (1, 1) SMEM scalar     o_ref: (TILE_B, 1) VMEM
    x = x_ref[...]
    w = w_ref[...]                                        # broadcasts over rows
    y = jnp.sum(x * w, axis=-1, keepdims=True) + b_ref[0, 0]
    o_ref[...] = y.astype(o_ref.dtype)


@functools.partial(jax.jit, static_argnames=("tile_b",))
def net_forward(x, params, *, tile_b=2048):
    """Fused 3-layer MLP forward (collapsed to one affine map) as a Pallas kernel.

    x: (B, 30) float32
    params: w1 (30,15), b1 (15,), w2 (15,5), b2 (5,), w3 (5,1), b3 (1,)
    returns: (B, 1) float32
    """
    B, F = x.shape
    assert F == IN_FEATURES, (B, F)
    x = x.astype(jnp.float32)

    # ---- Algebraic collapse of the three bias-carrying linear layers --------
    w_row = (params["w1"] @ params["w2"] @ params["w3"]).reshape(1, F)      # (1, 30)
    b_scalar = ((params["b1"] @ params["w2"] + params["b2"]) @ params["w3"]
                + params["b3"]).reshape(1, 1).astype(jnp.float32)           # (1, 1)

    # ---- Batch tiling (multiple of 8 rows; pad B up to a whole tile) --------
    tb = min(tile_b, _round_up(B, 8))
    b_pad = _round_up(B, tb)
    if b_pad != B:
        x = jnp.pad(x, ((0, b_pad - B), (0, 0)))
    grid = (b_pad // tb,)

    out = pl.pallas_call(
        _affine_kernel,
        out_shape=jax.ShapeDtypeStruct((b_pad, 1), jnp.float32),
        grid=grid,
        in_specs=[
            # Streamed input tile: (tb, 30), auto double-buffered over the grid.
            pl.BlockSpec((tb, F), lambda i: (i, 0)),
            # Collapsed weight row: constant block index -> resident across grid.
            pl.BlockSpec((1, F), lambda i: (0, 0)),
            # Scalar bias in SMEM (no padded (8,128) vreg load).
            pl.BlockSpec(memory_space=pltpu.MemorySpace.SMEM),
        ],
        out_specs=pl.BlockSpec((tb, 1), lambda i: (i, 0)),
        compiler_params=pltpu.CompilerParams(
            dimension_semantics=("parallel",),   # batch axis shardable across TCs (v7x)
        ),
    )(x, w_row, b_scalar)

    return out[:B]


def init_params(key):
    """Deterministic synthetic parameter init (uniform, Linear-style fan-in scaling)."""
    ks = jax.random.split(key, 6)

    def lin(kw, kb, fan_in, fan_out):
        bound = 1.0 / jnp.sqrt(fan_in)
        # Stored as (in, out) — transpose of torch's (out, in) layout.
        w = jax.random.uniform(kw, (fan_in, fan_out), jnp.float32, -bound, bound)
        b = jax.random.uniform(kb, (fan_out,), jnp.float32, -bound, bound)
        return w, b

    w1, b1 = lin(ks[0], ks[1], 30, 15)
    w2, b2 = lin(ks[2], ks[3], 15, 5)
    w3, b3 = lin(ks[4], ks[5], 5, 1)
    return {"w1": w1, "b1": b1, "w2": w2, "b2": b2, "w3": w3, "b3": b3}


def net_forward_ref(x, params):
    """Pure-JAX layer-by-layer reference for correctness checking."""
    h = x @ params["w1"] + params["b1"]
    h = h @ params["w2"] + params["b2"]
    h = h @ params["w3"] + params["b3"]
    return h


if __name__ == "__main__":
    key = jax.random.PRNGKey(0)
    k_x, k_p = jax.random.split(key)
    params = init_params(k_p)

    # Small demo shapes: (B=64) single-tile case and (B=200, tile=64)
    # multi-step grid with a non-divisible batch (exercises padding + slicing).
    for B, tb in ((64, 2048), (200, 64)):
        x = jax.random.normal(jax.random.fold_in(k_x, B), (B, IN_FEATURES),
                              dtype=jnp.float32)
        out = jax.block_until_ready(net_forward(x, params, tile_b=tb))
        ref = net_forward_ref(x, params)
        assert out.shape == (B, 1), out.shape
        assert jnp.allclose(out, ref, atol=1e-5, rtol=1e-4), (
            float(jnp.max(jnp.abs(out - ref))))

    print("KERNEL_OK")
</pallas_src>

<mosaic_0001>
module attributes {stable_mosaic.version = 11 : i64} {
  func.func @_affine_kernel(%arg0: i32, %arg1: memref<64x30xf32, #tpu.memory_space<vmem>>, %arg2: memref<1x30xf32, #tpu.memory_space<vmem>>, %arg3: memref<1x1xf32, #tpu.memory_space<smem>>, %arg4: memref<64x1xf32, #tpu.memory_space<vmem>>) attributes {dimension_semantics = [#tpu.dimension_semantics<parallel>], iteration_bounds = array<i64: 1>, scalar_prefetch = 0 : i64, scratch_operands = 0 : i64, tpu.core_type = #tpu.core_type<tc>, window_params = [{transform_indices = @transform_0, window_bounds = array<i64: 64, 30>}, {pipeline_mode = #tpu.pipeline_mode<synchronous>, transform_indices = @transform_1, window_bounds = array<i64: 1, 30>}, {transform_indices = @transform_2, window_bounds = array<i64: 1, 1>}, {transform_indices = @transform_3, window_bounds = array<i64: 64, 1>}]} {
    %c0 = arith.constant 0 : index
    %c0_0 = arith.constant 0 : index
    %0 = vector.load %arg1[%c0, %c0_0] : memref<64x30xf32, #tpu.memory_space<vmem>>, vector<64x30xf32>
    %c0_1 = arith.constant 0 : index
    %c0_2 = arith.constant 0 : index
    %1 = vector.load %arg2[%c0_1, %c0_2] : memref<1x30xf32, #tpu.memory_space<vmem>>, vector<1x30xf32>
    %2 = vector.broadcast %1 : vector<1x30xf32> to vector<64x30xf32>
    %3 = arith.mulf %0, %2 : vector<64x30xf32>
    %cst = arith.constant dense<0.000000e+00> : vector<64xf32>
    %4 = vector.multi_reduction <add>, %3, %cst [1] : vector<64x30xf32> to vector<64xf32>
    %5 = vector.shape_cast %4 : vector<64xf32> to vector<64x1xf32>
    %c0_3 = arith.constant 0 : index
    %c0_4 = arith.constant 0 : index
    %6 = memref.load %arg3[%c0_3, %c0_4] : memref<1x1xf32, #tpu.memory_space<smem>>
    %7 = vector.broadcast %6 : f32 to vector<64x1xf32>
    %8 = arith.addf %5, %7 : vector<64x1xf32>
    %c0_5 = arith.constant 0 : index
    %c0_6 = arith.constant 0 : index
    %9 = vector.load %arg4[%c0_5, %c0_6] : memref<64x1xf32, #tpu.memory_space<vmem>>, vector<64x1xf32>
    tpu.vector_store %arg4[%c0_5, %c0_6], %8 {strides = array<i32>} : memref<64x1xf32, #tpu.memory_space<vmem>>, vector<64x1xf32>,
    return
  }
  func.func @transform_0(%arg0: i32) -> (i32, i32) {
    %c0_i32 = arith.constant 0 : i32
    %c0_i32_0 = arith.constant 0 : i32
    return %arg0, %c0_i32 : i32, i32
  }
  func.func @transform_1(%arg0: i32) -> (i32, i32) {
    %c0_i32 = arith.constant 0 : i32
    %c0_i32_0 = arith.constant 0 : i32
    %c0_i32_1 = arith.constant 0 : i32
    return %c0_i32, %c0_i32_0 : i32, i32
  }
  func.func @transform_2(%arg0: i32) -> (i32, i32) {
    %c0_i32 = arith.constant 0 : i32
    %c0_i32_0 = arith.constant 0 : i32
    %c0_i32_1 = arith.constant 0 : i32
    return %c0_i32, %c0_i32_0 : i32, i32
  }
  func.func @transform_3(%arg0: i32) -> (i32, i32) {
    %c0_i32 = arith.constant 0 : i32
    %c0_i32_0 = arith.constant 0 : i32
    return %arg0, %c0_i32 : i32, i32
  }
}

</mosaic_0001>

<bundles_post_ra>
// kernel: net_forward.1
= control target key start
LH: loop header
LB: loop body
LE: loop exit
PB: predicated region body
PF: predicated region fallthrough
CT: control target
= control target key end

     0   :  { %vm38_vm0 = vcmask 244736   ;;  %vm73_vm1 = vcmask 7168   ;;  %s177_s0 = inlined_call_operand.vmem [shape: f32[64,30], index: 0, kind: input, shape index: {}]   ;;  %s178_s1 = inlined_call_operand.vmem [shape: f32[1,30], index: 1, kind: input, shape index: {}]   ;;  %s179_s2 = inlined_call_operand.<no memory space> [shape: f32[1,1], index: 2, kind: input, shape index: {}]   ;;  %s180_s3 = inlined_call_operand.vmem [shape: f32[64,1], index: 3, kind: output, shape index: {}]  }
   0x1   :  { %v17_v0 = vld [vmem:[%s177_s0 + $0x10] sm:$0xff]  ;;  %v86_v1 = vld [vmem:[%s178_s1] ss:$0 sm:$0xff]  ;;  %v18_v5 = vld [vmem:[%s177_s0 + $0x18] sm:$0xff]  ;;  %v64_v25 = vstv %s179_s2 }
   0x2   :  { %v15_v2 = vld [vmem:[%s177_s0] sm:$0xff]  ;;  %v32_v3 = vmul.f32 %v86_v1, %v17_v0  ;;  %v16_v6 = vld [vmem:[%s177_s0 + $0x8] sm:$0xff]  ;;  %v33_v7 = vmul.f32 %v86_v1, %v18_v5  ;;  %v22_v17 = vld [vmem:[%s177_s0 + $0x38] sm:$0xff] }
   0x3   :  { %v30_v4 = vmul.f32 %v86_v1, %v15_v2  ;;  %v31_v8 = vmul.f32 %v86_v1, %v16_v6  ;;  %v20_v9 = vld [vmem:[%s177_s0 + $0x28] sm:$0xff]  ;;  %v19_v10 = vld [vmem:[%s177_s0 + $0x20] sm:$0xff]  ;;  %v21_v18 = vld [vmem:[%s177_s0 + $0x30] sm:$0xff]  ;;  %v37_v21 = vmul.f32 %v86_v1, %v22_v17 }
   0x4   :  { %v45_v11 = vsel %vm38_vm0, %v32_v3, 0.0  ;;  %v48_v13 = vsel %vm38_vm0, %v33_v7, 0.0  ;;  %v35_v15 = vmul.f32 %v86_v1, %v20_v9  ;;  %v34_v16 = vmul.f32 %v86_v1, %v19_v10 }
   0x5   :  { %v39_v12 = vsel %vm38_vm0, %v30_v4, 0.0  ;;  %46 = vadd.xlane.f32.xlu1 %v45_v11  ;;  %v42_v14 = vsel %vm38_vm0, %v31_v8, 0.0  ;;  %v36_v22 = vmul.f32 %v86_v1, %v21_v18  ;;  %v60_v23 = vsel %vm38_vm0, %v37_v21, 0.0 }
   0x6   :  { %40 = vadd.xlane.f32.xlu0 %v39_v12  ;;  %v54_v19 = vsel %vm38_vm0, %v35_v15, 0.0  ;;  %v51_v20 = vsel %vm38_vm0, %v34_v16, 0.0 }
   0x7   :  { %v57_v24 = vsel %vm38_vm0, %v36_v22, 0.0 }
   0x9   :  { %49 = vadd.xlane.f32.xlu1 %v48_v13 }
   0xa   :  { %43 = vadd.xlane.f32.xlu0 %v42_v14 }
   0xd   :  { %55 = vadd.xlane.f32.xlu1 %v54_v19 }
   0xe   :  { %52 = vadd.xlane.f32.xlu0 %v51_v20 }
  0x11   :  { %61 = vadd.xlane.f32.xlu1 %v60_v23 }
  0x12   :  { %58 = vadd.xlane.f32.xlu0 %v57_v24 }
  0x92   :  { %v47_v26 = vpop.xlane.xlu1 %46 }
  0x93   :  { %v41_v27 = vpop.xlane.xlu0 %40  ;;  %v67_v28 = vadd.f32 %v64_v25, %v47_v26 }
  0x94   :  { %v65_v29 = vadd.f32 %v64_v25, %v41_v27 }
  0x95   :  { %76 = vst.msk [vmem:[%s180_s3 + $0x10] sm:$0xff] %vm73_vm1, %v67_v28 }
  0x96   :  { %74 = vst.msk [vmem:[%s180_s3] sm:$0xff] %vm73_vm1, %v65_v29  ;;  %v50_v30 = vpop.xlane.xlu1 %49 }
  0x97   :  { %v44_v31 = vpop.xlane.xlu0 %43  ;;  %v68_v32 = vadd.f32 %v64_v25, %v50_v30 }
  0x98   :  { %v66_v33 = vadd.f32 %v64_v25, %v44_v31 }
  0x99   :  { %77 = vst.msk [vmem:[%s180_s3 + $0x18] sm:$0xff] %vm73_vm1, %v68_v32 }
  0x9a   :  { %75 = vst.msk [vmem:[%s180_s3 + $0x8] sm:$0xff] %vm73_vm1, %v66_v33  ;;  %v56_v34 = vpop.xlane.xlu1 %55 }
  0x9b   :  { %v53_v35 = vpop.xlane.xlu0 %52  ;;  %v70_v36 = vadd.f32 %v64_v25, %v56_v34 }
  0x9c   :  { %v69_v37 = vadd.f32 %v64_v25, %v53_v35 }
  0x9d   :  { %79 = vst.msk [vmem:[%s180_s3 + $0x28] sm:$0xff] %vm73_vm1, %v70_v36 }
  0x9e   :  { %78 = vst.msk [vmem:[%s180_s3 + $0x20] sm:$0xff] %vm73_vm1, %v69_v37  ;;  %v62_v38 = vpop.xlane.xlu1 %61 }
  0x9f   :  { %v59_v39 = vpop.xlane.xlu0 %58  ;;  %v72_v40 = vadd.f32 %v64_v25, %v62_v38 }
  0xa0   :  { %v71_v41 = vadd.f32 %v64_v25, %v59_v39 }
  0xa1   :  { %81 = vst.msk [vmem:[%s180_s3 + $0x38] sm:$0xff] %vm73_vm1, %v72_v40 }
  0xa2   :  { %80 = vst.msk [vmem:[%s180_s3 + $0x30] sm:$0xff] %vm73_vm1, %v71_v41 }

</bundles_post_ra>
